<compile_context>
chip_gen: v6e
topology: v6e:2x2x1
jax: 0.10.0
libtpu: 0.0.40
codegen_flags: <defaults>
</compile_context>

<pallas_src>
import functools

import jax
import jax.numpy as jnp
from jax.experimental import pallas as pl
from jax.experimental.pallas import tpu as pltpu


# ----------------------------------------------------------------------------
# Fused kernel: pre-blend -> synthetic denoiser (cond & uncond) -> CFG -> post-blend
# Per grid step it sees one (C, tile_hw) slab of one batch sample.
# ----------------------------------------------------------------------------
def _fused_kernel(sigma_sref,                       # SMEM (B,) scalar-prefetched
                  x_ref, noise_ref, latent_ref,     # (1, C, tile_hw) VMEM
                  mask_ref,                         # (1, 1, tile_hw) VMEM
                  wmixT_ref,                        # (C, C) VMEM, resident
                  bias_c_ref, bias_u_ref,           # (1, C, 1) VMEM
                  out_ref,                          # (1, C, tile_hw) VMEM
                  *, cond_scale):
    b = pl.program_id(0)
    s = sigma_sref[b]                               # scalar sigma from SMEM

    m = mask_ref[0]                                 # (1, tile_hw) -> broadcasts over C
    one_minus_m = 1.0 - m
    lat = latent_ref[0]                             # (C, tile_hw)

    # 1) inpaint pre-blend (EPS noise_scaling: latent + noise*sigma)
    x_blend = x_ref[0] * m + (lat + noise_ref[0] * s) * one_minus_m

    # 2) synthetic denoiser: channel mix kept lane-dense as (C,C) @ (C,HW);
    #    cond/uncond differ only by their precomputed conditioning bias.
    y = jnp.dot(wmixT_ref[...], x_blend, preferred_element_type=jnp.float32)
    cond_pred = y + bias_c_ref[0]                   # (C,1) bias broadcasts over HW
    uncond_pred = y + bias_u_ref[0]

    # CFG combine
    cfg = uncond_pred + (cond_pred - uncond_pred) * cond_scale

    # 3) inpaint post-blend
    out_ref[0] = (cfg * m + lat * one_minus_m).astype(out_ref.dtype)


def _pick_tile_hw(hw, max_tile=16384):
    """Largest lane-dense (multiple-of-128) divisor of HW up to max_tile."""
    if hw % 128 != 0:
        return hw            # full-extent block (always legal)
    if hw <= max_tile:
        return hw
    best = 128
    for d in range(128, max_tile + 1, 128):
        if hw % d == 0:
            best = d
    return best


# ----------------------------------------------------------------------------
# KSamplerX0Inpaint.forward (Pallas version)
# ----------------------------------------------------------------------------
def ksampler_x0_inpaint_forward(x, sigma, uncond_tokens, cond_tokens, cond_scale,
                                denoise_mask, noise, latent_image,
                                w_mix, w_cond, b_time):
    # TODO(synk): model_options hooks (denoise_mask_function, sampler_cfg_function,
    #             sampler_post_cfg_function), ControlNet/gligen/area accumulation are
    #             Python-level data-dependent control flow and are not modeled here.
    B, C, H, W = x.shape
    HW = H * W

    # Pure metadata reshapes (contiguous) -> no extra HBM traffic.
    x_f = x.reshape(B, C, HW)
    noise_f = noise.reshape(B, C, HW)
    latent_f = latent_image.reshape(B, C, HW)
    mask_f = denoise_mask.reshape(B, 1, HW).astype(x.dtype)

    # Tiny precompute (stands in for the conditioning path of apply_model):
    #   bias = mean_t(tokens) @ W_cond + sigma * b_time   -> (B, C)
    bias_c = jnp.mean(cond_tokens, axis=1) @ w_cond + sigma[:, None] * b_time[0]
    bias_u = jnp.mean(uncond_tokens, axis=1) @ w_cond + sigma[:, None] * b_time[0]
    bias_c = bias_c.reshape(B, C, 1).astype(jnp.float32)
    bias_u = bias_u.reshape(B, C, 1).astype(jnp.float32)
    w_mix_t = jnp.transpose(w_mix)   # (C, C): channel mix as wT @ x(C,HW), lane-dense

    tile_hw = _pick_tile_hw(HW)
    n_tiles = HW // tile_hw

    blk = pl.BlockSpec((1, C, tile_hw), lambda b, t, sig: (b, 0, t))

    out = pl.pallas_call(
        functools.partial(_fused_kernel, cond_scale=float(cond_scale)),
        out_shape=jax.ShapeDtypeStruct((B, C, HW), x.dtype),
        grid_spec=pltpu.PrefetchScalarGridSpec(
            num_scalar_prefetch=1,                    # sigma -> SMEM
            grid=(B, n_tiles),
            in_specs=[
                blk,                                                    # x
                blk,                                                    # noise
                blk,                                                    # latent
                pl.BlockSpec((1, 1, tile_hw), lambda b, t, sig: (b, 0, t)),   # mask
                pl.BlockSpec((C, C), lambda b, t, sig: (0, 0)),         # w_mix^T (resident)
                pl.BlockSpec((1, C, 1), lambda b, t, sig: (b, 0, 0)),   # bias cond
                pl.BlockSpec((1, C, 1), lambda b, t, sig: (b, 0, 0)),   # bias uncond
            ],
            out_specs=blk,
        ),
        compiler_params=pltpu.CompilerParams(
            dimension_semantics=("parallel", "parallel")),
    )(sigma.astype(jnp.float32), x_f, noise_f, latent_f, mask_f,
      w_mix_t, bias_c, bias_u)

    return out.reshape(B, C, H, W)


# ----------------------------------------------------------------------------
# Pure-JAX reference (matches the PyTorch semantics)
# ----------------------------------------------------------------------------
def reference_forward(x, sigma, uncond_tokens, cond_tokens, cond_scale,
                      denoise_mask, noise, latent_image, w_mix, w_cond, b_time):
    B, C, H, W = x.shape
    m = jnp.broadcast_to(denoise_mask, (B, C, H, W))
    lm = 1.0 - m
    sr = sigma.reshape(B, 1, 1, 1)
    x_blend = x * m + (latent_image + noise * sr) * lm

    def model(xin, s, ctok):
        bias = jnp.mean(ctok, axis=1) @ w_cond + s[:, None] * b_time[0]   # (N,C)
        xm = xin.transpose(0, 2, 3, 1).reshape(xin.shape[0], H * W, C)
        y = xm @ w_mix + bias[:, None, :]
        return y.reshape(xin.shape[0], H, W, C).transpose(0, 3, 1, 2)

    input_x = jnp.concatenate([x_blend, x_blend], axis=0)
    c_all = jnp.concatenate([cond_tokens, uncond_tokens], axis=0)
    s_all = jnp.concatenate([sigma, sigma], axis=0)
    out = model(input_x, s_all, c_all)
    cond_pred, uncond_pred = out[:B], out[B:]
    cfg = uncond_pred + (cond_pred - uncond_pred) * cond_scale
    return cfg * m + latent_image * lm


if __name__ == "__main__":
    B, C, H, W = 2, 4, 16, 16
    T, D = 8, 32
    cond_scale = 7.5

    key = jax.random.PRNGKey(0)
    ks = jax.random.split(key, 10)
    x = jax.random.normal(ks[0], (B, C, H, W), jnp.float32)
    noise = jax.random.normal(ks[1], (B, C, H, W), jnp.float32)
    latent_image = jax.random.normal(ks[2], (B, C, H, W), jnp.float32)
    denoise_mask = (jax.random.uniform(ks[3], (B, 1, H, W)) > 0.5).astype(jnp.float32)
    sigma = jax.random.uniform(ks[4], (B,), jnp.float32, 0.1, 5.0)
    cond_tokens = jax.random.normal(ks[5], (B, T, D), jnp.float32)
    uncond_tokens = jax.random.normal(ks[6], (B, T, D), jnp.float32)

    # deterministic synthetic "model" parameters
    w_mix = jax.random.normal(ks[7], (C, C), jnp.float32) * 0.2 + jnp.eye(C, dtype=jnp.float32)
    w_cond = jax.random.normal(ks[8], (D, C), jnp.float32) * 0.1
    b_time = jax.random.normal(ks[9], (1, C), jnp.float32) * 0.1

    out = ksampler_x0_inpaint_forward(x, sigma, uncond_tokens, cond_tokens, cond_scale,
                                      denoise_mask, noise, latent_image,
                                      w_mix, w_cond, b_time)
    out = jax.block_until_ready(out)

    ref = reference_forward(x, sigma, uncond_tokens, cond_tokens, cond_scale,
                            denoise_mask, noise, latent_image, w_mix, w_cond, b_time)
    assert out.shape == (B, C, H, W)
    assert jnp.allclose(out, ref, atol=1e-4, rtol=1e-4), "mismatch vs reference"
    print("KERNEL_OK")
</pallas_src>

<mosaic_0001>
module attributes {stable_mosaic.version = 11 : i64} {
  func.func @_fused_kernel(%arg0: i32, %arg1: i32, %arg2: memref<2xf32, #tpu.memory_space<smem>>, %arg3: memref<1x4x256xf32, #tpu.memory_space<vmem>>, %arg4: memref<1x4x256xf32, #tpu.memory_space<vmem>>, %arg5: memref<1x4x256xf32, #tpu.memory_space<vmem>>, %arg6: memref<1x1x256xf32, #tpu.memory_space<vmem>>, %arg7: memref<4x4xf32, #tpu.memory_space<vmem>>, %arg8: memref<1x4x1xf32, #tpu.memory_space<vmem>>, %arg9: memref<1x4x1xf32, #tpu.memory_space<vmem>>, %arg10: memref<1x4x256xf32, #tpu.memory_space<vmem>>) attributes {dimension_semantics = [#tpu.dimension_semantics<parallel>, #tpu.dimension_semantics<parallel>], iteration_bounds = array<i64: 2, 1>, scalar_prefetch = 1 : i64, scratch_operands = 0 : i64, tpu.core_type = #tpu.core_type<tc>, window_params = [{transform_indices = @transform_0, window_bounds = array<i64: 1, 4, 256>}, {transform_indices = @transform_1, window_bounds = array<i64: 1, 4, 256>}, {transform_indices = @transform_2, window_bounds = array<i64: 1, 4, 256>}, {transform_indices = @transform_3, window_bounds = array<i64: 1, 1, 256>}, {pipeline_mode = #tpu.pipeline_mode<synchronous>, transform_indices = @transform_4, window_bounds = array<i64: 4, 4>}, {transform_indices = @transform_5, window_bounds = array<i64: 1, 4, 1>}, {transform_indices = @transform_6, window_bounds = array<i64: 1, 4, 1>}, {transform_indices = @transform_7, window_bounds = array<i64: 1, 4, 256>}]} {
    %0 = arith.index_cast %arg0 : i32 to index
    %1 = memref.load %arg2[%0] : memref<2xf32, #tpu.memory_space<smem>>
    %c0 = arith.constant 0 : index
    %c0_0 = arith.constant 0 : index
    %c0_1 = arith.constant 0 : index
    %2 = vector.load %arg6[%c0, %c0_0, %c0_1] : memref<1x1x256xf32, #tpu.memory_space<vmem>>, vector<1x1x256xf32>
    %3 = vector.shape_cast %2 : vector<1x1x256xf32> to vector<1x256xf32>
    %cst = arith.constant 1.000000e+00 : f32
    %4 = vector.broadcast %cst : f32 to vector<1x256xf32>
    %5 = arith.subf %4, %3 : vector<1x256xf32>
    %c0_2 = arith.constant 0 : index
    %c0_3 = arith.constant 0 : index
    %c0_4 = arith.constant 0 : index
    %6 = vector.load %arg5[%c0_2, %c0_3, %c0_4] : memref<1x4x256xf32, #tpu.memory_space<vmem>>, vector<1x4x256xf32>
    %7 = vector.shape_cast %6 : vector<1x4x256xf32> to vector<4x256xf32>
    %c0_5 = arith.constant 0 : index
    %c0_6 = arith.constant 0 : index
    %c0_7 = arith.constant 0 : index
    %8 = vector.load %arg3[%c0_5, %c0_6, %c0_7] : memref<1x4x256xf32, #tpu.memory_space<vmem>>, vector<1x4x256xf32>
    %9 = vector.shape_cast %8 : vector<1x4x256xf32> to vector<4x256xf32>
    %10 = vector.broadcast %3 : vector<1x256xf32> to vector<4x256xf32>
    %11 = arith.mulf %9, %10 : vector<4x256xf32>
    %c0_8 = arith.constant 0 : index
    %c0_9 = arith.constant 0 : index
    %c0_10 = arith.constant 0 : index
    %12 = vector.load %arg4[%c0_8, %c0_9, %c0_10] : memref<1x4x256xf32, #tpu.memory_space<vmem>>, vector<1x4x256xf32>
    %13 = vector.shape_cast %12 : vector<1x4x256xf32> to vector<4x256xf32>
    %14 = vector.broadcast %1 : f32 to vector<4x256xf32>
    %15 = arith.mulf %13, %14 : vector<4x256xf32>
    %16 = arith.addf %7, %15 : vector<4x256xf32>
    %17 = vector.broadcast %5 : vector<1x256xf32> to vector<4x256xf32>
    %18 = arith.mulf %16, %17 : vector<4x256xf32>
    %19 = arith.addf %11, %18 : vector<4x256xf32>
    %c0_11 = arith.constant 0 : index
    %c0_12 = arith.constant 0 : index
    %20 = vector.load %arg7[%c0_11, %c0_12] : memref<4x4xf32, #tpu.memory_space<vmem>>, vector<4x4xf32>
    %cst_13 = arith.constant dense<0.000000e+00> : vector<4x256xf32>
    %21 = tpu.matmul %20, %19, %cst_13 {dimension_numbers = #tpu.dot_dimension_numbers<[1], [0], [0], [1], [0, 0, 1, 1], [], []>} : vector<4x4xf32>, vector<4x256xf32>, vector<4x256xf32> -> vector<4x256xf32>
    %c0_14 = arith.constant 0 : index
    %c0_15 = arith.constant 0 : index
    %c0_16 = arith.constant 0 : index
    %22 = vector.load %arg8[%c0_14, %c0_15, %c0_16] : memref<1x4x1xf32, #tpu.memory_space<vmem>>, vector<1x4x1xf32>
    %23 = vector.shape_cast %22 : vector<1x4x1xf32> to vector<4x1xf32>
    %24 = vector.broadcast %23 : vector<4x1xf32> to vector<4x256xf32>
    %25 = arith.addf %21, %24 : vector<4x256xf32>
    %c0_17 = arith.constant 0 : index
    %c0_18 = arith.constant 0 : index
    %c0_19 = arith.constant 0 : index
    %26 = vector.load %arg9[%c0_17, %c0_18, %c0_19] : memref<1x4x1xf32, #tpu.memory_space<vmem>>, vector<1x4x1xf32>
    %27 = vector.shape_cast %26 : vector<1x4x1xf32> to vector<4x1xf32>
    %28 = vector.broadcast %27 : vector<4x1xf32> to vector<4x256xf32>
    %29 = arith.addf %21, %28 : vector<4x256xf32>
    %30 = arith.subf %25, %29 : vector<4x256xf32>
    %cst_20 = arith.constant 7.500000e+00 : f32
    %31 = vector.broadcast %cst_20 : f32 to vector<4x256xf32>
    %32 = arith.mulf %30, %31 : vector<4x256xf32>
    %33 = arith.addf %29, %32 : vector<4x256xf32>
    %34 = vector.broadcast %3 : vector<1x256xf32> to vector<4x256xf32>
    %35 = arith.mulf %33, %34 : vector<4x256xf32>
    %36 = vector.broadcast %5 : vector<1x256xf32> to vector<4x256xf32>
    %37 = arith.mulf %7, %36 : vector<4x256xf32>
    %38 = arith.addf %35, %37 : vector<4x256xf32>
    %c0_21 = arith.constant 0 : index
    %c0_22 = arith.constant 0 : index
    %c0_23 = arith.constant 0 : index
    %39 = vector.load %arg10[%c0_21, %c0_22, %c0_23] : memref<1x4x256xf32, #tpu.memory_space<vmem>>, vector<1x4x256xf32>
    %40 = vector.shape_cast %39 : vector<1x4x256xf32> to vector<4x256xf32>
    %41 = vector.shape_cast %38 : vector<4x256xf32> to vector<1x4x256xf32>
    tpu.vector_store %arg10[%c0_21, %c0_22, %c0_23], %41 {strides = array<i32>} : memref<1x4x256xf32, #tpu.memory_space<vmem>>, vector<1x4x256xf32>,
    return
  }
  func.func @transform_0(%arg0: i32, %arg1: i32, %arg2: memref<2xf32, #tpu.memory_space<smem>>) -> (i32, i32, i32) {
    %c0_i32 = arith.constant 0 : i32
    %c0_i32_0 = arith.constant 0 : i32
    return %arg0, %c0_i32, %arg1 : i32, i32, i32
  }
  func.func @transform_1(%arg0: i32, %arg1: i32, %arg2: memref<2xf32, #tpu.memory_space<smem>>) -> (i32, i32, i32) {
    %c0_i32 = arith.constant 0 : i32
    %c0_i32_0 = arith.constant 0 : i32
    return %arg0, %c0_i32, %arg1 : i32, i32, i32
  }
  func.func @transform_2(%arg0: i32, %arg1: i32, %arg2: memref<2xf32, #tpu.memory_space<smem>>) -> (i32, i32, i32) {
    %c0_i32 = arith.constant 0 : i32
    %c0_i32_0 = arith.constant 0 : i32
    return %arg0, %c0_i32, %arg1 : i32, i32, i32
  }
  func.func @transform_3(%arg0: i32, %arg1: i32, %arg2: memref<2xf32, #tpu.memory_space<smem>>) -> (i32, i32, i32) {
    %c0_i32 = arith.constant 0 : i32
    %c0_i32_0 = arith.constant 0 : i32
    return %arg0, %c0_i32, %arg1 : i32, i32, i32
  }
  func.func @transform_4(%arg0: i32, %arg1: i32, %arg2: memref<2xf32, #tpu.memory_space<smem>>) -> (i32, i32) {
    %c0_i32 = arith.constant 0 : i32
    %c0_i32_0 = arith.constant 0 : i32
    %c0_i32_1 = arith.constant 0 : i32
    return %c0_i32, %c0_i32_0 : i32, i32
  }
  func.func @transform_5(%arg0: i32, %arg1: i32, %arg2: memref<2xf32, #tpu.memory_space<smem>>) -> (i32, i32, i32) {
    %c0_i32 = arith.constant 0 : i32
    %c0_i32_0 = arith.constant 0 : i32
    %c0_i32_1 = arith.constant 0 : i32
    return %arg0, %c0_i32, %c0_i32_0 : i32, i32, i32
  }
  func.func @transform_6(%arg0: i32, %arg1: i32, %arg2: memref<2xf32, #tpu.memory_space<smem>>) -> (i32, i32, i32) {
    %c0_i32 = arith.constant 0 : i32
    %c0_i32_0 = arith.constant 0 : i32
    %c0_i32_1 = arith.constant 0 : i32
    return %arg0, %c0_i32, %c0_i32_0 : i32, i32, i32
  }
  func.func @transform_7(%arg0: i32, %arg1: i32, %arg2: memref<2xf32, #tpu.memory_space<smem>>) -> (i32, i32, i32) {
    %c0_i32 = arith.constant 0 : i32
    %c0_i32_0 = arith.constant 0 : i32
    return %arg0, %c0_i32, %arg1 : i32, i32, i32
  }
}

</mosaic_0001>

<bundles_post_ra>
// kernel: tpu_custom_call.1
= control target key start
LH: loop header
LB: loop body
LE: loop exit
PB: predicated region body
PF: predicated region fallthrough
CT: control target
= control target key end

     0   :  { %s1304_s0 = inlined_call_operand.vmem [shape: f32[2], index: 0, kind: input, shape index: {}]   ;;  %s1305_s1 = inlined_call_operand.vmem [shape: f32[2,4,256], index: 1, kind: input, shape index: {}]   ;;  %s1306_s2 = inlined_call_operand.hbm [shape: f32[2,4,256], index: 2, kind: input, shape index: {}]   ;;  %s1307_s3 = inlined_call_operand.hbm [shape: f32[2,4,256], index: 3, kind: input, shape index: {}]   ;;  %s1308_s4 = inlined_call_operand.vmem [shape: f32[2,1,256], index: 4, kind: input, shape index: {}]   ;;  %s1309_s5 = inlined_call_operand.vmem [shape: f32[4,4], index: 5, kind: input, shape index: {}]   ;;  %s1310_s6 = inlined_call_operand.vmem [shape: f32[2,4,1], index: 6, kind: input, shape index: {}]   ;;  %s1311_s7 = inlined_call_operand.vmem [shape: f32[2,4,1], index: 7, kind: input, shape index: {}]   ;;  %s1312_s8 = inlined_call_operand.hbm [shape: f32[2,4,256], index: 8, kind: output, shape index: {}]  }
   0x1   :  { %1317 = sst [smem:[#allocation19_spill]] %s1306_s2  ;;  %s13_s29 = sshll.u32 %s1304_s0, 4  ;;  %s14_s29 = int_to_ptr.vmem [resolvable:$true] %s13_s29 }
   0x2   :  { %1318 = sst [smem:[#allocation20_spill]] %s1307_s3  ;;  %s908_s30 = scalar_lea.vmem %s14_s29, 16 }
   0x3   :  { %p909_p0 = scmp.ne.s32.totalorder %s14_s29, %s908_s30  ;;  %p913_p1 = scmp.lt.s32.totalorder %s14_s29, %s14_s29 }
   0x4   :  { %p914_p2 = scmp.lt.s32.totalorder %s908_s30, %s908_s30 }
   0x6   :  { %p915_p3 = por %p914_p2, %p913_p1 }
   0x8   :  { %p916_p4 = pnand %p915_p3, %p909_p0 }
   0xa   :  { %919 = shalt.err (!%p916_p4)  }
   0xb   :  { %s1064_s9 = smov [#allocation3]  }
   0xc   :  { %16 = dma.vmem_to_smem %s14_s29, 16, %s1064_s9, [#allocation2] }
   0xd   :  { %1026 = dma.done.wait [#allocation2], 16 }
   0xe   :  { %1027 = vsyncadd [#allocation2], 4294967280 }
   0xf   :  { %18 = sfence }
  0x10   :  { %19 = vsyncpa [#allocation5], 0 }
  0x11   :  { %21 = vsyncpa [#allocation5 + $0x1], 0 }
  0x12   :  { %22 = vsyncpa [#allocation8], 0 }
  0x13   :  { %24 = vsyncpa [#allocation8 + $0x1], 0 }
  0x14   :  { %25 = vsyncpa [#allocation6], 0 }
  0x15   :  { %27 = vsyncpa [#allocation6 + $0x1], 0  ;;  %s1118_s0 = smov 0   ;;  %s1120_s10 = smov 0  }
  0x16   :  { %s1122_s11 = smov 0   ;;  %s1124_s12 = smov 0  }
  0x17   :  { %s1126_s13 = smov 0   ;;  %s1128_s14 = smov 0  }
  0x18 LB: > { %1319 = sst [smem:[#allocation14_spill]] %s1046_s10  ;;  %s806_s15 = sadd.s32 4294967295, %s1062_s14   ;;  %s1062_s14 = sphi %s1128_s14, %s33_s14   ;;  %s1058_s13 = sphi %s1126_s13, %s1338_s13   ;;  %s1054_s12 = sphi %s1124_s12, %s1337_s12   ;;  %s1050_s11 = sphi %s1122_s11, %s1336_s11   ;;  %s1046_s10 = sphi %s1120_s10, %s1335_s10   ;;  %s1042_s0 = sphi %s1118_s0, %s1334_s0  }
  0x19   : > { %1320 = sst [smem:[#allocation15_spill]] %s1050_s11  ;;  %s807_s16 = sadd.s32 4294967294, %s1062_s14  }
  0x1a   : > { %1321 = sst [smem:[#allocation16_spill]] %s1058_s13  ;;  %s45_s17 = sadd.s32 1, %s1058_s13 }
  0x1b   : > { %s82_s18 = sadd.s32 1, %s1050_s11  ;;  %p47_p5 = scmp.ge.s32.totalorder %s45_s17, 2 }
  0x1c   : > { %p89_p6 = scmp.ne.s32.totalorder %s1050_s11, %s1046_s10  ;;  %p90_p7 = scmp.eq.s32.totalorder %s1062_s14, 0 }
  0x1d   : > { %p95_p8 = scmp.ne.s32.totalorder %s1046_s10, %s1042_s0  ;;  %s1340_s17 = smov (%p47_p5, %s45_s17), 0 }
  0x1e   : > { %1322 = sst [smem:[#allocation17_spill]] %s1340_s17  ;;  %p1159_p9 = por %p90_p7, %p89_p6 }
  0x1f   : > { %p96_p10 = scmp.eq.s32.totalorder %s806_s15, 0  ;;  %s77_s20 = ssub.s32 %s1058_s13, %s1340_s17 }
  0x20   : > { %p250_p11 = scmp.eq.s32.totalorder %s806_s15, 1  ;;  %p80_p12 = scmp.eq.s32.totalorder %s77_s20, 0 }
  0x21   : > { %p1165_p13 = por %p96_p10, %p95_p8  ;;  %p256_p1 = scmp.eq.s32.totalorder %s807_s16, 1 }
  0x22   : > { %p1169_p0 = por %p250_p11, %p89_p6  ;;  %p854_p4 = scmp.lt.s32.totalorder %s1062_s14, 2 }
  0x23   : > { %s1174_s23 = scalar_select %p80_p12, %s1050_s11, %s82_s18  }
  0x24   : > { %p1176_p2 = por %p256_p1, %p95_p8  ;;  %s1183_s25 = sand.u32 1, %s1050_s11  }
  0x25   : > { %1326 = sst [smem:[#allocation18_spill]] %s1174_s23  ;;  %s810_s26 = sshll.u32 %s1183_s25, 3 }
  0x26   : > { %s833_s27 = sshll.u32 %s1058_s13, 7  ;;  %s1328_s2 = sld [smem:[#allocation19_spill]] }
  0x27   : > { %s296_s9 = scalar_lea.vmem [#allocation4], %s810_s26  ;;  %p1192_p5 = pnand %p854_p4, %p1159_p9 }
  0x28   : > { %s306_s15 = sshll.u32 %s296_s9, 4  ;;  %p816_p6 = scmp.ge.s32.totalorder %s1062_s14, 1  ;;  %s307_s15 = int_to_ptr.vmem [resolvable:$true] %s306_s15 }
  0x29   : > { %p358_p7 = scmp.lt.s32.totalorder %s1062_s14, 3  ;;  %s293_s18 = scalar_lea.sflag [#allocation5], %s1183_s25 }
  0x2a   : > { %p922_p8 = pneg %p1192_p5  ;;  %s933_s20 = scalar_lea.vmem %s307_s15, 128 }
  0x2b   : > { %p934_p10 = scmp.ne.s32.totalorder %s307_s15, %s933_s20  ;;  %s1065_s28 = smov [#allocation4]  }
  0x2c   : > { %s304_s30 = scalar_lea.hbm %s1328_s2, %s833_s27  ;;  %s938_s29 = sshll.u32 %s1065_s28, 4  ;;  %s939_s29 = int_to_ptr.vmem [resolvable:$false] %s938_s29 }
  0x2d   : > { %p936_p11 = pnand %p934_p10, %p922_p8  ;;  %s940_s19 = scalar_lea.vmem %s939_s29, 256 }
  0x2e   : > { %p941_p9 = scmp.lt.s32.totalorder %s307_s15, %s939_s29  ;;  %p942_p1 = scmp.lt.s32.totalorder %s940_s19, %s933_s20 }
  0x2f   : > { %p937_p12 = pneg %p936_p11 }
  0x30   : > { %p943_p4 = por %p942_p1, %p941_p9 }
  0x32   : > { %p944_p3 = pnand %p943_p4, %p937_p12 }
  0x34   : > { %947 = shalt.err (!%p944_p3)
}
  0x35   : > { %846 = dma.hbm_to_vmem [thread:$0]  (!%p1192_p5), %s304_s30, 128, %s307_s15, %s293_s18  }
  0x36   : > { %p1210_p10 = pnand %p816_p6, %p358_p7  ;;  %s1331_s3 = sld [smem:[#allocation20_spill]] }
  0x37   : > { %s317_s29 = scalar_lea.vmem [#allocation7], %s810_s26  ;;  %s314_s17 = scalar_lea.sflag [#allocation8], %s1183_s25 }
  0x38   : > { %s327_s19 = sshll.u32 %s317_s29, 4  ;;  %s1066_s30 = smov [#allocation7]   ;;  %s328_s19 = int_to_ptr.vmem [resolvable:$true] %s327_s19 }
  0x39   : > { %s961_s13 = scalar_lea.vmem %s328_s19, 128  ;;  %s966_s15 = sshll.u32 %s1066_s30, 4  ;;  %s967_s15 = int_to_ptr.vmem [resolvable:$false] %s966_s15 }
  0x3a   : > { %p962_p3 = scmp.ne.s32.totalorder %s328_s19, %s961_s13  ;;  %s968_s18 = scalar_lea.vmem %s967_s15, 256 }
  0x3b   : > { %p969_p6 = scmp.lt.s32.totalorder %s328_s19, %s967_s15  ;;  %p970_p7 = scmp.lt.s32.totalorder %s968_s18, %s961_s13 }
  0x3c   : > { %s325_s20 = scalar_lea.hbm %s1331_s3, %s833_s27  ;;  %p964_p11 = pnand %p962_p3, %p922_p8 }
  0x3d   : > { %p971_p9 = por %p970_p7, %p969_p6 }
  0x3e   : > { %p965_p12 = pneg %p964_p11 }
  0x40   : > { %p972_p1 = pnand %p971_p9, %p965_p12 }
  0x42   : > { %975 = shalt.err (!%p972_p1)
}
  0x43   : > { %849 = dma.hbm_to_vmem [thread:$0]  (!%p1192_p5), %s325_s20, 128, %s328_s19, %s314_s17  }
  0x44   : > { %362 = sbr.rel (%p1210_p10) target bundleno = 319 (0x13f), region = 48  ;;  %s1226_s2 = sand.u32 (!%p1210_p10), 1, %s1046_s10  }
  0x45   : > { %s1229_s25 = sshll.u32 (!%p1210_p10), %s1226_s2, 3  ;;  %s365_s26 = scalar_lea.sflag (!%p1210_p10), [#allocation5], %s1226_s2 }
  0x49   : > { %1029 = dma.done.wait (%p1165_p13), %s365_s26, 128  }
  0x4a   : > { %1031 = vsyncadd (%p1165_p13), %s365_s26, 4294967168  ;;  %s374_s17 = scalar_lea.sflag [#allocation8], %s1226_s2  ;;  %s377_s27 = scalar_lea.vmem [#allocation7], %s1229_s25 }
  0x4b   : > { %1033 = dma.done.wait (%p1165_p13), %s374_s17, 128  }
  0x4c   : > { %1035 = vsyncadd (%p1165_p13), %s374_s17, 4294967168  ;;  %p439_p5 = scmp.lt.s32.totalorder %s1054_s12, 1  ;;  %v474_v0 = vlaneseq  ;;  %s468_s16 = sld [smem:[#allocation3 + %s1054_s12]]  ;;  %v1067_v1 = vmov 0.0   ;;  %v1068_v3 = vmov 0   ;;  %v471_v9 = vld [vmem:[%s377_s27] sm:$0xff] }
  0x4d   : > { %580 = vmatprep.mubr.f32.mxu0 %v1067_v1  ;;  %907 = vset.pattern.permute.xlu0 %v1068_v3  ;;  %vm511_vm0 = vcmask 1043456   ;;  %v504_v27 = vld [vmem:[%s1309_s5] sm:$0xf]  ;;  %vm507_vm1 = vcmask 31744   ;;  %s1069_s21 = smov [#allocation9]  }
  0x4e   : > { %s440_s9 = scalar_select %p439_p5, %s1054_s12, 1  ;;  %v475_v2 = vshrl.u32 %v474_v0, 7 }
  0x50   : > { %s835_s28 = sshll.u32 %s440_s9, 3  ;;  %s822_s20 = sshll.u32 %s440_s9, 1  ;;  %v476_v4 = vsub.s32 0, %v475_v2  ;;  %v480_v5 = vsub.s32 1, %v475_v2 }
  0x51   : > { %s457_s19 = scalar_lea.vmem %s1308_s4, %s822_s20  ;;  %s446_s18 = scalar_lea.vmem %s1305_s1, %s835_s28 }
  0x52   : > { %s823_s26 = sshll.u32 %s440_s9, 2  ;;  %v469_v6 = vld [vmem:[%s457_s19] sm:$0x3]  ;;  %v488_v7 = vstv %s468_s16  ;;  %s1332_s20 = scalar_lea.vmem [#allocation4], %s1229_s25 }
  0x53   : > { %s462_s3 = scalar_lea.vmem %s1310_s6, %s823_s26  ;;  %s466_s10 = scalar_lea.vmem %s1311_s7, %s823_s26  ;;  %v470_v8 = vsub.f32 1.0, %v469_v6  ;;  %v477_v10 = vrot.slane %v469_v6, %v476_v4  ;;  %v481_v11 = vrot.slane %v469_v6, %v480_v5  ;;  %v487_v12 = vld [vmem:[%s1332_s20] sm:$0xff] }
  0x54   : > { %v587_v13 = vld [vmem:[%s462_s3] sm:$0xf]  ;;  %v489_v15 = vmul.f32 %v488_v7, %v487_v12  ;;  %s836_s3 = sshll.u32 %s1054_s12, 7  ;;  %s623_s28 = scalar_lea.sflag [#allocation6], %s1226_s2 }
  0x55   : > { %v472_v14 = vld [vmem:[%s446_s18] sm:$0xff]  ;;  %590 = vperm.xlu0 %907, %v587_v13   ;;  %v484_v16 = vcombine.low %v477_v10, %v481_v11  ;;  %v495_v17 = vrot.slane %v470_v8, %v476_v4  ;;  %v499_v18 = vrot.slane %v470_v8, %v480_v5  ;;  %s637_s9 = scalar_lea.hbm %s1312_s8, %s836_s3  ;;  %s980_s19 = sshll.u32 %s1069_s21, 4  ;;  %s981_s19 = int_to_ptr.vmem [resolvable:$false] %s980_s19 }
  0x56   : > { %v595_v19 = vld [vmem:[%s466_s10] sm:$0xf]  ;;  %v490_v20 = vadd.f32 %v489_v15, %v471_v9  ;;  %s437_s10 = scalar_lea.vmem [#allocation9], %s1229_s25  ;;  %s982_s12 = scalar_lea.vmem %s981_s19, 256 }
  0x57   : > { %v486_v21 = vmul.f32 %v484_v16, %v472_v14  ;;  %v500_v22 = vcombine.low %v495_v17, %v499_v18  ;;  %s639_s13 = sshll.u32 %s437_s10, 4  ;;  %s640_s13 = int_to_ptr.vmem [resolvable:$true] %s639_s13 }
  0x58   : > { %s976_s29 = scalar_lea.vmem %s640_s13, 128  ;;  %p983_p10 = scmp.lt.s32.totalorder %s640_s13, %s981_s19 }
  0x59   : > { %598 = vperm.xlu0 %907, %v595_v19   ;;  %v502_v23 = vmul.f32 %v500_v22, %v490_v20  ;;  %v611_v24 = vmul.f32 %v500_v22, %v471_v9  ;;  %p977_p13 = scmp.ne.s32.totalorder %s640_s13, %s976_s29  ;;  %p984_p3 = scmp.lt.s32.totalorder %s982_s12, %s976_s29 }
  0x5b   : > { %v503_v25 = vadd.f32 %v502_v23, %v486_v21  ;;  %v613_v43 = vcombine.high %v611_v24, %v611_v24  ;;  %p978_p8 = pnand %p977_p13, %p1169_p0  ;;  %p985_p11 = por %p984_p3, %p983_p10 }
  0x5d   : > { %v506_v26 = vcombine.high %v503_v25, %v503_v25  ;;  %p979_p4 = pneg %p978_p8 }
  0x5f   : > { %825 = vmatprep.subr.msk.mxu0 %vm511_vm0, %v506_v26  ;;  %p986_p12 = pnand %p985_p11, %p979_p4 }
  0x60   : > { %826 = vmatpush1.msk.msra.mxu0 %vm511_vm0, %v503_v25 }
  0x61   : > { %827 = vmatmul.mubr.msk.f32.vlgmr.msra.gmra.mxu0 %vm507_vm1, %v504_v27 }
  0xd0   : > { %v591_v28 = vpop.permute.xlu0 %590 }
  0xd4   : > { %v599_v29 = vpop.permute.xlu0 %598 }
 0x121   : > { %v582_v30 = vpop.f32.mrf.mxu0 }
 0x122   : > { %v593_v31 = vadd.f32 %v591_v28, %v582_v30  ;;  %v601_v32 = vadd.f32 %v599_v29, %v582_v30 }
 0x123   : > { %v584_v33 = vpop.f32.mrf.mxu0 }
 0x124   : > { %v603_v34 = vsub.f32 %v593_v31, %v601_v32  ;;  %v594_v35 = vadd.f32 %v591_v28, %v584_v33  ;;  %v602_v36 = vadd.f32 %v599_v29, %v584_v33 }
 0x126   : > { %v605_v37 = vmul.f32 7.5, %v603_v34  ;;  %v604_v38 = vsub.f32 %v594_v35, %v602_v36 }
 0x128   : > { %v607_v39 = vadd.f32 %v605_v37, %v601_v32  ;;  %v606_v40 = vmul.f32 7.5, %v604_v38 }
 0x12a   : > { %v609_v41 = vmul.f32 %v607_v39, %v477_v10  ;;  %v608_v42 = vadd.f32 %v606_v40, %v602_v36 }
 0x12c   : > { %v610_v44 = vmul.f32 %v608_v42, %v481_v11  ;;  %v615_v45 = vadd.f32 %v611_v24, %v609_v41 }
 0x12e   : > { %v616_v46 = vadd.f32 %v613_v43, %v610_v44 }
 0x130   : > { %v619_v47 = vcombine.low %v615_v45, %v616_v46 }
 0x132   : > { %621 = vst [vmem:[%s437_s10] sm:$0xff] %v619_v47 }
 0x133   : > { %989 = shalt.err (!%p986_p12)
}
 0x134   : > { %s990_s25 = scalar_lea.hbm %s637_s9, 128  ;;  %s994_s15 = scalar_lea.hbm %s1312_s8, 256 }
 0x135   : > { %p991_p6 = scmp.ne.s32.totalorder %s637_s9, %s990_s25  ;;  %p995_p1 = scmp.lt.s32.totalorder %s637_s9, %s1312_s8 }
 0x136   : > { %p996_p5 = scmp.lt.s32.totalorder %s994_s15, %s990_s25 }
 0x137   : > { %p992_p7 = pnand %p991_p6, %p1169_p0 }
 0x138   : > { %p997_p13 = por %p996_p5, %p995_p1 }
 0x139   : > { %p993_p9 = pneg %p992_p7 }
 0x13b   : > { %p998_p8 = pnand %p997_p13, %p993_p9 }
 0x13d   : > { %1001 = shalt.err (!%p998_p8)
}
 0x13e   : > { %841 = dma.vmem_to_hbm [thread:$0]  (%p1169_p0), %s640_s13, 128, %s637_s9, %s623_s28  }
 0x13f PF: > { %s651_s17 = sand.u32 1, %s1042_s0   ;;  %p1333_p4 = scmp.ge.s32.totalorder %s1062_s14, 2 }
 0x140   : > { %s652_s20 = scalar_lea.sflag [#allocation6], %s651_s17 }
 0x141   : > { %p851_p10 = pnand %p1333_p4, %p1176_p2 }
 0x143   : > { %p852_p3 = pneg %p851_p10 }
 0x145   : > { %1037 = dma.done.wait (%p852_p3), %s652_s20, 128  }
 0x146   : > { %1039 = vsyncadd (%p852_p3), %s652_s20, 4294967168  ;;  %s33_s14 = sadd.s32 1, %s1062_s14   ;;  %s1334_s0 = sld [smem:[#allocation14_spill]] }
 0x147   : > { %p30_p11 = scmp.ge.s32.totalorder %s33_s14, 4   ;;  %s1335_s10 = sld [smem:[#allocation15_spill]] }
 0x148   : > { %s1336_s11 = sld [smem:[#allocation18_spill]] }
 0x149   : > { %s1337_s12 = sld [smem:[#allocation16_spill]]  ;;  %32 = sbr.rel (!%p30_p11) target bundleno = 24 (0x18), region = 118 }
 0x14a   : > { %s1338_s13 = sld [smem:[#allocation17_spill]] }
 0x14e   :  { %657 = vsyncpa [#allocation5], 1 }
 0x14f   :  { %659 = vsyncpa [#allocation5 + $0x1], 1 }
 0x150   :  { %660 = vsyncpa [#allocation8], 1 }
 0x151   :  { %662 = vsyncpa [#allocation8 + $0x1], 1 }
 0x152   :  { %663 = vsyncpa [#allocation6], 1 }
 0x153   :  { %665 = vsyncpa [#allocation6 + $0x1], 1 }

</bundles_post_ra>
